<compile_context>
chip_gen: v6e
topology: v6e:2x2x1
jax: 0.10.0
libtpu: 0.0.40
codegen_flags: <defaults>
</compile_context>

<pallas_src>
import jax
import jax.numpy as jnp
from jax.experimental import pallas as pl
from jax.experimental.pallas import tpu as pltpu


# ----------------------------- kernel body ---------------------------------

def _weighted_kernel(p_ref, x_ref, y_ref, o_ref):
    # sigmoid in f32 for accuracy, then a single cast to the streaming dtype.
    p = jax.nn.sigmoid(p_ref[...].astype(jnp.float32)).astype(x_ref.dtype)  # (1, D_eff)
    x = x_ref[...]                                                          # (T, D_eff)
    y = y_ref[...]                                                          # (T, D_eff)
    # z = x*p + y*(1-p)  ==  y + p*(x - y)   (one mul + one add + one sub)
    o_ref[...] = (y + p * (x - y)).astype(o_ref.dtype)


# --------------------------- tiling heuristics ------------------------------

def _vmem_limit_bytes():
    """Generation-aware scoped-VMEM limit (leave headroom for temporaries)."""
    cap = 128 * 1024 * 1024
    try:
        cap = int(pltpu.get_tpu_info().vmem_capacity_bytes)
    except Exception:
        pass
    if cap >= 128 * 1024 * 1024:            # v5e / v6e: 128 MiB physical
        return 64 * 1024 * 1024
    # v7x: 64 MiB physical per TC -> ~40 MiB with headroom
    return min(40 * 1024 * 1024, (cap * 5) // 8)


def _choose_tile_rows(n_rows, n_cols, itemsize, vmem_limit, sublane):
    """Largest sublane-aligned row tile that divides n_rows and fits the budget.

    Budget: 3 streamed arrays (x, y, out) x 2 pipeline buffers each, kept under
    ~half the scoped VMEM limit (headroom for the resident params block and
    compiler temporaries). Prefers >= 2 grid steps so the pipeline overlaps
    DMA/compute and the row axis can shard across both TCs on v7x.
    """
    per_row_bytes = 6 * n_cols * itemsize
    budget_rows = max(sublane, (vmem_limit // 2) // max(1, per_row_bytes))
    if n_rows % sublane != 0:
        return n_rows                       # full-extent block is always legal
    target = min(n_rows, budget_rows)
    target = max(sublane, (target // sublane) * sublane)

    best = None
    for t in range(target, sublane - 1, -sublane):
        if n_rows % t == 0:
            best = t
            break
    if best is None:
        return n_rows
    if best == n_rows and n_rows >= 2 * sublane:
        # whole array fit in one tile: still split so the grid has >= 2 steps.
        half = max(sublane, (n_rows // 2 // sublane) * sublane)
        for t in range(half, sublane - 1, -sublane):
            if n_rows % t == 0:
                return t
    return best


# ------------------------------ wrapper -------------------------------------

def my_weighted(x, y, params, *, tile_b=None, lane_pack=True):
    """x, y: (B, D); params: (1, D). Returns sigmoid-weighted blend, shape (B, D)."""
    B, D = x.shape
    assert y.shape == (B, D), "x and y must have the same shape"
    assert params.shape == (1, D), "params must be (1, dim)"
    dtype = x.dtype
    itemsize = jnp.dtype(dtype).itemsize
    # sublane packing per dtype: 8 for f32, 16 for bf16, 32 for int8/fp8
    sublane = max(8, 32 // max(1, itemsize))

    # Lane-dense repack: (B, D) -> (B/k, k*D) (free row-major reshape in HBM).
    # params is tiled k times along the lane axis so broadcast semantics hold.
    k = 1
    if lane_pack and D % 128 == 0 and D < 1024:
        while (k * 2) * D <= 4096 and B % (k * 2) == 0:
            k *= 2
    B_eff, D_eff = B // k, D * k
    x_eff = x.reshape(B_eff, D_eff)
    y_eff = y.reshape(B_eff, D_eff)
    p_eff = jnp.tile(params, (1, k)) if k > 1 else params

    vmem_limit = _vmem_limit_bytes()

    if tile_b is None:
        tile_b = _choose_tile_rows(B_eff, D_eff, itemsize, vmem_limit, sublane)
    tile_b = int(min(tile_b, B_eff))
    # Fall back to a single full-extent block if the tile is not legal.
    if B_eff % tile_b != 0 or (tile_b != B_eff and tile_b % sublane != 0):
        tile_b = B_eff

    grid = (B_eff // tile_b,)

    out = pl.pallas_call(
        _weighted_kernel,
        out_shape=jax.ShapeDtypeStruct((B_eff, D_eff), dtype),
        grid_spec=pltpu.PrefetchScalarGridSpec(
            num_scalar_prefetch=0,
            grid=grid,
            in_specs=[
                # params: same block every step -> stays resident in VMEM
                pl.BlockSpec((1, D_eff), lambda i: (0, 0)),
                pl.BlockSpec((tile_b, D_eff), lambda i: (i, 0)),   # x tile
                pl.BlockSpec((tile_b, D_eff), lambda i: (i, 0)),   # y tile
            ],
            out_specs=pl.BlockSpec((tile_b, D_eff), lambda i: (i, 0)),
        ),
        compiler_params=pltpu.CompilerParams(
            dimension_semantics=("parallel",),   # shard rows across TCs (v7x)
            vmem_limit_bytes=vmem_limit,
        ),
    )(p_eff, x_eff, y_eff)

    return out.reshape(B, D)


# ------------------------------- demo ---------------------------------------

if __name__ == "__main__":
    key = jax.random.PRNGKey(0)

    # Small shapes consistent with the module: batch=8, dim=128, f32.
    B, D = 8, 128
    kx, ky, kp, k2 = jax.random.split(key, 4)
    x = jax.random.normal(kx, (B, D), dtype=jnp.float32)
    y = jax.random.normal(ky, (B, D), dtype=jnp.float32)
    params = 0.5 * jax.random.normal(kp, (1, D), dtype=jnp.float32)

    z = jax.block_until_ready(my_weighted(x, y, params))
    p = jax.nn.sigmoid(params)
    z_ref = x * p + y * (1.0 - p)
    assert z.shape == (B, D)
    assert jnp.allclose(z, z_ref, atol=1e-5, rtol=1e-5), "f32 mismatch vs reference"

    # Second check: bf16 streams + multi-step, lane-packed grid path.
    B2, D2 = 2048, 256
    kx2, ky2, kp2 = jax.random.split(k2, 3)
    x2 = jax.random.normal(kx2, (B2, D2), dtype=jnp.bfloat16)
    y2 = jax.random.normal(ky2, (B2, D2), dtype=jnp.bfloat16)
    params2 = 0.5 * jax.random.normal(kp2, (1, D2), dtype=jnp.float32)

    z2 = jax.block_until_ready(my_weighted(x2, y2, params2))
    p2 = jax.nn.sigmoid(params2)
    z2_ref = x2.astype(jnp.float32) * p2 + y2.astype(jnp.float32) * (1.0 - p2)
    assert z2.dtype == jnp.bfloat16 and z2.shape == (B2, D2)
    assert jnp.allclose(z2.astype(jnp.float32), z2_ref, atol=5e-2, rtol=5e-2), \
        "bf16 mismatch vs reference"

    print("KERNEL_OK")
</pallas_src>

<mosaic_0001>
module attributes {stable_mosaic.version = 11 : i64} {
  func.func @_weighted_kernel(%arg0: i32, %arg1: memref<1x1024xf32, #tpu.memory_space<vmem>>, %arg2: memref<1x1024xf32, #tpu.memory_space<vmem>>, %arg3: memref<1x1024xf32, #tpu.memory_space<vmem>>, %arg4: memref<1x1024xf32, #tpu.memory_space<vmem>>) attributes {dimension_semantics = [#tpu.dimension_semantics<parallel>], iteration_bounds = array<i64: 1>, scalar_prefetch = 0 : i64, scratch_operands = 0 : i64, tpu.core_type = #tpu.core_type<tc>, window_params = [{pipeline_mode = #tpu.pipeline_mode<synchronous>, transform_indices = @transform_0, window_bounds = array<i64: 1, 1024>}, {transform_indices = @transform_1, window_bounds = array<i64: 1, 1024>}, {transform_indices = @transform_2, window_bounds = array<i64: 1, 1024>}, {transform_indices = @transform_3, window_bounds = array<i64: 1, 1024>}]} {
    %c0 = arith.constant 0 : index
    %c0_0 = arith.constant 0 : index
    %0 = vector.load %arg1[%c0, %c0_0] : memref<1x1024xf32, #tpu.memory_space<vmem>>, vector<1x1024xf32>
    %1 = arith.negf %0 : vector<1x1024xf32>
    %2 = math.exp %1 : vector<1x1024xf32>
    %cst = arith.constant 1.000000e+00 : f32
    %3 = vector.broadcast %cst : f32 to vector<1x1024xf32>
    %4 = arith.addf %3, %2 : vector<1x1024xf32>
    %5 = arith.divf %3, %4 : vector<1x1024xf32>
    %c0_1 = arith.constant 0 : index
    %c0_2 = arith.constant 0 : index
    %6 = vector.load %arg2[%c0_1, %c0_2] : memref<1x1024xf32, #tpu.memory_space<vmem>>, vector<1x1024xf32>
    %c0_3 = arith.constant 0 : index
    %c0_4 = arith.constant 0 : index
    %7 = vector.load %arg3[%c0_3, %c0_4] : memref<1x1024xf32, #tpu.memory_space<vmem>>, vector<1x1024xf32>
    %8 = arith.subf %6, %7 : vector<1x1024xf32>
    %9 = arith.mulf %5, %8 : vector<1x1024xf32>
    %10 = arith.addf %7, %9 : vector<1x1024xf32>
    %c0_5 = arith.constant 0 : index
    %c0_6 = arith.constant 0 : index
    %11 = vector.load %arg4[%c0_5, %c0_6] : memref<1x1024xf32, #tpu.memory_space<vmem>>, vector<1x1024xf32>
    tpu.vector_store %arg4[%c0_5, %c0_6], %10 {strides = array<i32>} : memref<1x1024xf32, #tpu.memory_space<vmem>>, vector<1x1024xf32>,
    return
  }
  func.func @transform_0(%arg0: i32) -> (i32, i32) {
    %c0_i32 = arith.constant 0 : i32
    %c0_i32_0 = arith.constant 0 : i32
    %c0_i32_1 = arith.constant 0 : i32
    return %c0_i32, %c0_i32_0 : i32, i32
  }
  func.func @transform_1(%arg0: i32) -> (i32, i32) {
    %c0_i32 = arith.constant 0 : i32
    %c0_i32_0 = arith.constant 0 : i32
    return %arg0, %c0_i32 : i32, i32
  }
  func.func @transform_2(%arg0: i32) -> (i32, i32) {
    %c0_i32 = arith.constant 0 : i32
    %c0_i32_0 = arith.constant 0 : i32
    return %arg0, %c0_i32 : i32, i32
  }
  func.func @transform_3(%arg0: i32) -> (i32, i32) {
    %c0_i32 = arith.constant 0 : i32
    %c0_i32_0 = arith.constant 0 : i32
    return %arg0, %c0_i32 : i32, i32
  }
}

</mosaic_0001>

<bundles_post_ra>
// kernel: tpu_custom_call.1
= control target key start
LH: loop header
LB: loop body
LE: loop exit
PB: predicated region body
PF: predicated region fallthrough
CT: control target
= control target key end

     0   :  { %8 = vsyncpa [#allocation3], 0  ;;  %s210_s0 = inlined_call_operand.hbm [shape: f32[1,1024], index: 0, kind: input, shape index: {}]   ;;  %s211_s1 = inlined_call_operand.hbm [shape: f32[1,1024], index: 1, kind: input, shape index: {}]   ;;  %s212_s2 = inlined_call_operand.hbm [shape: f32[1,1024], index: 2, kind: input, shape index: {}]   ;;  %s213_s3 = inlined_call_operand.hbm [shape: f32[1,1024], index: 3, kind: output, shape index: {}]  }
   0x1   :  { %9 = vsyncpa [#allocation6], 0 }
   0x2   :  { %10 = vsyncpa [#allocation4], 0  ;;  %s174_s12 = smov [#allocation5]   ;;  %s175_s14 = smov [#allocation2]  }
   0x3   :  { %s27_s13 = sshll.u32 %s174_s12, 4  ;;  %s17_s15 = sshll.u32 %s175_s14, 4  ;;  %s28_s13 = int_to_ptr.vmem [resolvable:$true] %s27_s13  ;;  %s18_s15 = int_to_ptr.vmem [resolvable:$true] %s17_s15 }
   0x4   :  { %s96_s16 = scalar_lea.vmem %s28_s13, 128  ;;  %p101_p1 = scmp.lt.s32.totalorder %s28_s13, %s28_s13 }
   0x5   :  { %p97_p0 = scmp.ne.s32.totalorder %s28_s13, %s96_s16  ;;  %p102_p2 = scmp.lt.s32.totalorder %s96_s16, %s96_s16 }
   0x7   :  { %p103_p3 = por %p102_p2, %p101_p1 }
   0x9   :  { %p104_p4 = pnand %p103_p3, %p97_p0 }
   0xb   :  { %107 = shalt.err (!%p104_p4)
}
   0xc   :  { %30 = dma.hbm_to_vmem [thread:$0]  %s211_s1, 128, %s28_s13, [#allocation6]  }
   0xd   :  { %s116_s19 = scalar_lea.vmem %s18_s15, 128  ;;  %p121_p6 = scmp.lt.s32.totalorder %s18_s15, %s18_s15 }
   0xe   :  { %p117_p5 = scmp.ne.s32.totalorder %s18_s15, %s116_s19  ;;  %p122_p7 = scmp.lt.s32.totalorder %s116_s19, %s116_s19 }
  0x10   :  { %p123_p8 = por %p122_p7, %p121_p6 }
  0x12   :  { %p124_p9 = pnand %p123_p8, %p117_p5 }
  0x14   :  { %127 = shalt.err (!%p124_p9)
}
  0x15   :  { %20 = dma.hbm_to_vmem [thread:$0]  %s210_s0, 128, %s18_s15, [#allocation3]  }
  0x16   :  { %s176_s22 = smov [#allocation7]  }
  0x17   :  { %s37_s23 = sshll.u32 %s176_s22, 4  ;;  %s38_s23 = int_to_ptr.vmem [resolvable:$true] %s37_s23 }
  0x18   :  { %s136_s24 = scalar_lea.vmem %s38_s23, 128  ;;  %p141_p11 = scmp.lt.s32.totalorder %s38_s23, %s38_s23 }
  0x19   :  { %p137_p10 = scmp.ne.s32.totalorder %s38_s23, %s136_s24  ;;  %p142_p12 = scmp.lt.s32.totalorder %s136_s24, %s136_s24 }
  0x1b   :  { %p143_p13 = por %p142_p12, %p141_p11 }
  0x1d   :  { %p144_p0 = pnand %p143_p13, %p137_p10 }
  0x1f   :  { %147 = shalt.err (!%p144_p0)
}
  0x20   :  { %40 = dma.hbm_to_vmem [thread:$0]  %s212_s2, 128, %s38_s23, [#allocation6]  }
  0x21   :  { %168 = dma.done.wait [#allocation3], 128  }
  0x22   :  { %169 = vsyncadd [#allocation3], 4294967168 }
  0x23   :  { %170 = dma.done.wait [#allocation6], 256  }
  0x24   :  { %171 = vsyncadd [#allocation6], 4294967040  ;;  %v50_v0 = vld [vmem:[#allocation2] sm:$0xff]  ;;  %v57_v4 = vld [vmem:[#allocation5] sm:$0xff]  ;;  %s177_s0 = smov [#allocation8]  }
  0x25   :  { %v79_v1 = vmul.f32 -1.442695, %v50_v0  ;;  %v58_v5 = vld [vmem:[#allocation7] sm:$0xff]  ;;  %s69_s26 = sshll.u32 %s177_s0, 4  ;;  %s70_s26 = int_to_ptr.vmem [resolvable:$true] %s69_s26 }
  0x26   :  { %v59_v6 = vsub.f32 %v57_v4, %v58_v5  ;;  %s148_s2 = scalar_lea.vmem %s70_s26, 128  ;;  %p153_p2 = scmp.lt.s32.totalorder %s70_s26, %s70_s26 }
  0x27   :  { %84 = vpow2.f32 %v79_v1  ;;  %p149_p1 = scmp.ne.s32.totalorder %s70_s26, %s148_s2  ;;  %p154_p3 = scmp.lt.s32.totalorder %s148_s2, %s148_s2 }
  0x29   :  { %p155_p4 = por %p154_p3, %p153_p2 }
  0x2b   :  { %p156_p5 = pnand %p155_p4, %p149_p1 }
  0x34   :  { %v85_v2 = vpop.eup %84 }
  0x35   :  { %v54_v3 = vadd.f32 1.0, %v85_v2 }
  0x37   :  { %86 = vrcp.f32 %v54_v3 }
  0x44   :  { %v87_v7 = vpop.eup %86 }
  0x45   :  { %v60_v8 = vmul.f32 %v87_v7, %v59_v6 }
  0x47   :  { %v61_v9 = vadd.f32 %v60_v8, %v58_v5 }
  0x49   :  { %62 = vst [vmem:[#allocation8] sm:$0xff] %v61_v9 }
  0x4a   :  { %159 = shalt.err (!%p156_p5)
}
  0x4b   :  { %72 = dma.vmem_to_hbm [thread:$0]  %s70_s26, 128, %s213_s3, [#allocation4]  }
  0x4c   :  { %172 = dma.done.wait [#allocation4], 128  }
  0x4d   :  { %173 = vsyncadd [#allocation4], 4294967168 }
  0x4e   :  { %76 = vsyncpa [#allocation3], 1 }
  0x4f   :  { %77 = vsyncpa [#allocation6], 1 }
  0x50   :  { %78 = vsyncpa [#allocation4], 1 }

</bundles_post_ra>
